<compile_context>
chip_gen: v5e
topology: v5e:2x2
jax: 0.10.0
libtpu: 0.0.40
codegen_flags: <defaults>
</compile_context>

<pallas_src>
import math

import jax
import jax.numpy as jnp
from jax.experimental import pallas as pl
from jax.experimental.pallas import tpu as pltpu

IN_FEATURES = 2   # output dim of the final Linear
HIDDEN = 16       # input dim of the final Linear (what the net actually consumes)
PACK = 64         # batch rows folded into one 128-lane output row (64 * 2 = 128)
K_PACK = PACK * HIDDEN        # 1024
N_PACK = PACK * IN_FEATURES   # 128

# Double-buffered x (8 MiB) + out (1 MiB) blocks at tile_r=2048, bf16 weight, plus
# in-kernel temporaries: ~24 MiB.  40 MiB < v7x's 64 MiB physical VMEM and is an
# explicit raise over v5e's 16 MiB scoped default.
VMEM_LIMIT_BYTES = 40 * 1024 * 1024


def _round_up(n, m):
    return ((n + m - 1) // m) * m


def pack_params(weight, bias):
    """Precompute packed parameters ONCE (init / parameter-update time, not per call).

    weight: (16, 2) f32 -> (1024, 128) bf16 block-diagonal (64 copies, ~256 KiB)
    bias:   (2,)    f32 -> (1, 128)    f32  (tiled 64x)
    """
    eye = jnp.eye(PACK, dtype=jnp.float32)                       # (64, 64)
    w_blk = jnp.einsum("pq,ij->piqj", eye, weight.astype(jnp.float32))
    w_blk = w_blk.reshape(K_PACK, N_PACK).astype(jnp.bfloat16)   # (1024, 128)
    b_packed = jnp.tile(bias.reshape(1, IN_FEATURES).astype(jnp.float32), (1, PACK))
    return w_blk, b_packed


def _generator_kernel(x_ref, w_ref, b_ref, o_ref):
    # x_ref: (tile_r, 1024) f32 | w_ref: (1024, 128) bf16
    # b_ref: (1, 128) f32       | o_ref: (tile_r, 128) f32
    h = jnp.maximum(x_ref[...], 0.0).astype(jnp.bfloat16)   # single ReLU (idempotent)
    y = jnp.dot(h, w_ref[...], preferred_element_type=jnp.float32)
    o_ref[...] = y + b_ref[...]


def generator_forward(x, w_blk, b_packed, *, tile_rows=2048):
    """x: (B, 16) f32; w_blk/b_packed from pack_params() -> (B, 2) f32."""
    B, K = x.shape
    assert K == HIDDEN, f"Generator consumes {HIDDEN}-feature inputs, got {K}"
    x = x.astype(jnp.float32)

    # Pad only up to the 64-row PACK boundary (<= 63 rows, and only for ragged B);
    # the ragged last *tile* is handled by Pallas partial blocks, not host padding.
    rem = B % PACK
    if rem:
        x = jnp.pad(x, ((0, PACK - rem), (0, 0)))
    b_pack_rows = x.shape[0] // PACK
    x_pack = x.reshape(b_pack_rows, K_PACK)                  # (B_pack, 1024)

    if b_pack_rows >= 16:
        # Keep >= 2 grid steps so v7x can shard the "parallel" batch axis over 2 TCs;
        # tile sublane dim stays a multiple of 8 (f32).
        tile_r = min(tile_rows, _round_up(pl.cdiv(b_pack_rows, 2), 8))
    else:
        # Tiny batch: one block whose sublane dim equals the full array dim (legal).
        tile_r = b_pack_rows
    grid = (pl.cdiv(b_pack_rows, tile_r),)

    cost = pl.CostEstimate(
        flops=2 * B * HIDDEN * IN_FEATURES,          # useful FLOPs, not 64x-inflated
        transcendentals=0,
        bytes_accessed=(x_pack.size * 4 + w_blk.size * 2
                        + b_packed.size * 4 + b_pack_rows * N_PACK * 4),
    )

    out_pack = pl.pallas_call(
        _generator_kernel,
        out_shape=jax.ShapeDtypeStruct((b_pack_rows, N_PACK), jnp.float32),
        grid_spec=pltpu.PrefetchScalarGridSpec(
            num_scalar_prefetch=0,
            grid=grid,
            in_specs=[
                pl.BlockSpec((tile_r, K_PACK), lambda i: (i, 0)),   # x: batch-tiled
                pl.BlockSpec((K_PACK, N_PACK), lambda i: (0, 0)),   # weight: resident
                pl.BlockSpec((1, N_PACK), lambda i: (0, 0)),        # bias: resident
            ],
            out_specs=pl.BlockSpec((tile_r, N_PACK), lambda i: (i, 0)),
        ),
        compiler_params=pltpu.CompilerParams(
            dimension_semantics=("parallel",),        # v7x: batch over both TCs
            vmem_limit_bytes=VMEM_LIMIT_BYTES,
        ),
        cost_estimate=cost,
    )(x_pack, w_blk, b_packed)

    # unpack: (B_pack, 128) -> (B_pack*64, 2) -> strip the <=63 padded rows
    return out_pack.reshape(b_pack_rows * PACK, IN_FEATURES)[:B]


def init_params(key):
    """Deterministic init mimicking PyTorch's nn.Linear default (U[-1/sqrt(fan_in), +])."""
    kw, kb = jax.random.split(key)
    bound = 1.0 / math.sqrt(HIDDEN)
    # Stored as [in, out] (transpose of PyTorch's [out, in]) for direct matmul.
    weight = jax.random.uniform(kw, (HIDDEN, IN_FEATURES), jnp.float32, -bound, bound)
    bias = jax.random.uniform(kb, (IN_FEATURES,), jnp.float32, -bound, bound)
    return weight, bias


if __name__ == "__main__":
    key = jax.random.PRNGKey(0)
    kx, kp = jax.random.split(key)

    batch = 200  # deliberately NOT a multiple of 64: exercises the <=63-row pad path
    x = jax.random.normal(kx, (batch, HIDDEN), dtype=jnp.float32)
    weight, bias = init_params(kp)
    w_blk, b_packed = pack_params(weight, bias)      # hoisted out of the forward

    out = generator_forward(x, w_blk, b_packed)
    out = jax.block_until_ready(out)

    # Pure-f32 JAX reference. Tolerance relaxed because the kernel uses bf16 matmul
    # operands (f32 accumulation; each output sums only 16 nonzero products).
    ref = jnp.maximum(x, 0.0) @ weight + bias
    assert out.shape == (batch, IN_FEATURES)
    max_err = float(jnp.max(jnp.abs(out - ref)))
    assert jnp.allclose(out, ref, atol=3e-2, rtol=3e-2), f"max_err={max_err}"

    print("KERNEL_OK")
</pallas_src>

<mosaic_0001>
module attributes {stable_mosaic.version = 11 : i64} {
  func.func @_generator_kernel(%arg0: i32, %arg1: memref<4x1024xf32, #tpu.memory_space<vmem>>, %arg2: memref<1024x128xbf16, #tpu.memory_space<vmem>>, %arg3: memref<1x128xf32, #tpu.memory_space<vmem>>, %arg4: memref<4x128xf32, #tpu.memory_space<vmem>>) attributes {dimension_semantics = [#tpu.dimension_semantics<parallel>], iteration_bounds = array<i64: 1>, scalar_prefetch = 0 : i64, scratch_operands = 0 : i64, tpu.core_type = #tpu.core_type<tc>, window_params = [{transform_indices = @transform_0, window_bounds = array<i64: 4, 1024>}, {pipeline_mode = #tpu.pipeline_mode<synchronous>, transform_indices = @transform_1, window_bounds = array<i64: 1024, 128>}, {pipeline_mode = #tpu.pipeline_mode<synchronous>, transform_indices = @transform_2, window_bounds = array<i64: 1, 128>}, {transform_indices = @transform_3, window_bounds = array<i64: 4, 128>}]} {
    %c0 = arith.constant 0 : index
    %c0_0 = arith.constant 0 : index
    %0 = vector.load %arg1[%c0, %c0_0] : memref<4x1024xf32, #tpu.memory_space<vmem>>, vector<4x1024xf32>
    %cst = arith.constant 0.000000e+00 : f32
    %1 = vector.broadcast %cst : f32 to vector<4x1024xf32>
    %2 = arith.maximumf %0, %1 : vector<4x1024xf32>
    %3 = arith.truncf %2 : vector<4x1024xf32> to vector<4x1024xbf16>
    %c0_1 = arith.constant 0 : index
    %c0_2 = arith.constant 0 : index
    %4 = vector.load %arg2[%c0_1, %c0_2] : memref<1024x128xbf16, #tpu.memory_space<vmem>>, vector<1024x128xbf16>
    %cst_3 = arith.constant dense<0.000000e+00> : vector<4x128xf32>
    %5 = tpu.matmul %3, %4, %cst_3 {dimension_numbers = #tpu.dot_dimension_numbers<[1], [0], [0], [1], [0, 0, 1, 1], [], []>} : vector<4x1024xbf16>, vector<1024x128xbf16>, vector<4x128xf32> -> vector<4x128xf32>
    %c0_4 = arith.constant 0 : index
    %c0_5 = arith.constant 0 : index
    %6 = vector.load %arg3[%c0_4, %c0_5] : memref<1x128xf32, #tpu.memory_space<vmem>>, vector<1x128xf32>
    %7 = vector.broadcast %6 : vector<1x128xf32> to vector<4x128xf32>
    %8 = arith.addf %5, %7 : vector<4x128xf32>
    %c0_6 = arith.constant 0 : index
    %c0_7 = arith.constant 0 : index
    %9 = vector.load %arg4[%c0_6, %c0_7] : memref<4x128xf32, #tpu.memory_space<vmem>>, vector<4x128xf32>
    tpu.vector_store %arg4[%c0_6, %c0_7], %8 {strides = array<i32>} : memref<4x128xf32, #tpu.memory_space<vmem>>, vector<4x128xf32>,
    return
  }
  func.func @transform_0(%arg0: i32) -> (i32, i32) {
    %c0_i32 = arith.constant 0 : i32
    %c0_i32_0 = arith.constant 0 : i32
    return %arg0, %c0_i32 : i32, i32
  }
  func.func @transform_1(%arg0: i32) -> (i32, i32) {
    %c0_i32 = arith.constant 0 : i32
    %c0_i32_0 = arith.constant 0 : i32
    %c0_i32_1 = arith.constant 0 : i32
    return %c0_i32, %c0_i32_0 : i32, i32
  }
  func.func @transform_2(%arg0: i32) -> (i32, i32) {
    %c0_i32 = arith.constant 0 : i32
    %c0_i32_0 = arith.constant 0 : i32
    %c0_i32_1 = arith.constant 0 : i32
    return %c0_i32, %c0_i32_0 : i32, i32
  }
  func.func @transform_3(%arg0: i32) -> (i32, i32) {
    %c0_i32 = arith.constant 0 : i32
    %c0_i32_0 = arith.constant 0 : i32
    return %arg0, %c0_i32 : i32, i32
  }
}

</mosaic_0001>

<bundles_post_ra>
// kernel: tpu_custom_call.1
= control target key start
LH: loop header
LB: loop body
LE: loop exit
PB: predicated region body
PF: predicated region fallthrough
CT: control target
= control target key end

     0   :  { %8 = vsyncpa [#allocation3], 0  ;;  %s1168_s0 = inlined_call_operand.hbm [shape: f32[4,1024], index: 0, kind: input, shape index: {}]   ;;  %s1169_s1 = inlined_call_operand.hbm [shape: bf16[1024,128], index: 1, kind: input, shape index: {}]   ;;  %s1170_s2 = inlined_call_operand.vmem [shape: f32[1,128], index: 2, kind: input, shape index: {}]   ;;  %s1171_s3 = inlined_call_operand.hbm [shape: f32[4,128], index: 3, kind: output, shape index: {}]  }
   0x1   :  { %9 = vsyncpa [#allocation6], 0 }
   0x2   :  { %10 = vsyncpa [#allocation4], 0  ;;  %s16_s14 = sshll.u32 %s1168_s0, 4  ;;  %s1131_s15 = smov [#allocation2]   ;;  %s17_s14 = int_to_ptr.hbm [resolvable:$true] %s16_s14 }
   0x3   :  { %s18_s16 = sshll.u32 %s1131_s15, 4  ;;  %s26_s19 = sshll.u32 %s1169_s1, 4  ;;  %s19_s16 = int_to_ptr.vmem [resolvable:$true] %s18_s16  ;;  %s27_s19 = int_to_ptr.hbm [resolvable:$true] %s26_s19 }
   0x4   :  { %21 = dma.hbm_to_vmem [thread:$0]  %s17_s14, 512, %s19_s16, [#allocation3]  }
   0x5   :  { %s1132_s20 = smov [#allocation5]   ;;  %s1133_s22 = smov 64  }
   0x6   :  { %s28_s21 = sshll.u32 %s1132_s20, 4  ;;  %s1134_s23 = smov 4   ;;  %s29_s21 = int_to_ptr.vmem [resolvable:$true] %s28_s21 }
   0x7   :  { %34 = dma.hbm_to_vmem [thread:$0]  %s27_s19, 8192, %s29_s21, [#allocation6], %s1133_s22, %s1133_s22, %s1134_s23  }
   0x8   :  { %1125 = dma.done.wait [#allocation3], 512  }
   0x9   :  { %1126 = vsyncadd [#allocation3], 4294966784 }
   0xa   :  { %1127 = dma.done.wait [#allocation6], 8192  }
   0xb   :  { %1128 = vsyncadd [#allocation6], 4294959104  ;;  %v990_v0 = vld [vmem:[#allocation5 + $0x38] sm:$0xff]  ;;  %v989_v4 = vld [vmem:[#allocation5 + $0x30] sm:$0xff]  ;;  %s1135_s24 = smov [#allocation7]   ;;  %s716_s28 = sshll.u32 %s1171_s3, 4  ;;  %s717_s28 = int_to_ptr.hbm [resolvable:$true] %s716_s28 }
   0xc   :  { %v998_v1 = vld [vmem:[#allocation5 + $0x78] sm:$0xff]  ;;  %604 = vmatpush.bf16.msra.mxu0 %v990_v0  ;;  %v997_v5 = vld [vmem:[#allocation5 + $0x70] sm:$0xff]  ;;  %v988_v8 = vld [vmem:[#allocation5 + $0x28] sm:$0xff]  ;;  %s714_s25 = sshll.u32 %s1135_s24, 4  ;;  %s715_s25 = int_to_ptr.vmem [resolvable:$true] %s714_s25 }
   0xd   :  { %v1006_v2 = vld [vmem:[#allocation5 + $0xb8] sm:$0xff]  ;;  %617 = vmatpush.bf16.msra.mxu1 %v998_v1  ;;  %v1005_v6 = vld [vmem:[#allocation5 + $0xb0] sm:$0xff]  ;;  %v996_v9 = vld [vmem:[#allocation5 + $0x68] sm:$0xff] }
   0xe   :  { %v1014_v3 = vld [vmem:[#allocation5 + $0xf8] sm:$0xff]  ;;  %630 = vmatpush.bf16.msra.mxu2 %v1006_v2  ;;  %v1013_v7 = vld [vmem:[#allocation5 + $0xf0] sm:$0xff]  ;;  %v1004_v10 = vld [vmem:[#allocation5 + $0xa8] sm:$0xff] }
   0xf   :  { %643 = vmatpush.bf16.msra.mxu3 %v1014_v3  ;;  %v1012_v11 = vld [vmem:[#allocation5 + $0xe8] sm:$0xff]  ;;  %v987_v12 = vld [vmem:[#allocation5 + $0x20] sm:$0xff]  ;;  %v986_v17 = vld [vmem:[#allocation5 + $0x18] sm:$0xff] }
  0x10   :  { %605 = vmatpush.bf16.msra.mxu0 %v989_v4  ;;  %v995_v13 = vld [vmem:[#allocation5 + $0x60] sm:$0xff]  ;;  %v46_v16 = vld [vmem:[#allocation2 + $0x8] sm:$0xff]  ;;  %v994_v18 = vld [vmem:[#allocation5 + $0x58] sm:$0xff] }
  0x11   :  { %618 = vmatpush.bf16.msra.mxu1 %v997_v5  ;;  %v1003_v14 = vld [vmem:[#allocation5 + $0xa0] sm:$0xff]  ;;  %v50_v19 = vmax.f32 %v46_v16, 0.0  ;;  %v1002_v20 = vld [vmem:[#allocation5 + $0x98] sm:$0xff]  ;;  %v985_v24 = vld [vmem:[#allocation5 + $0x10] sm:$0xff] }
  0x12   :  { %631 = vmatpush.bf16.msra.mxu2 %v1005_v6  ;;  %v1011_v15 = vld [vmem:[#allocation5 + $0xe0] sm:$0xff]  ;;  %v1010_v21 = vld [vmem:[#allocation5 + $0xd8] sm:$0xff]  ;;  %v993_v25 = vld [vmem:[#allocation5 + $0x50] sm:$0xff] }
  0x13   :  { %644 = vmatpush.bf16.msra.mxu3 %v1013_v7  ;;  %v45_v22 = vld [vmem:[#allocation2] sm:$0xff]  ;;  %59 = vst [vmem:[#allocation1 + $0x10] ss:$2 sm:$0xff] %v50_v19  ;;  %v1001_v26 = vld [vmem:[#allocation5 + $0x90] sm:$0xff]  ;;  %v48_v29 = vld [vmem:[#allocation2 + $0x18] sm:$0xff] }
  0x14   :  { %606 = vmatpush.bf16.msra.mxu0 %v988_v8  ;;  %v49_v23 = vmax.f32 %v45_v22, 0.0  ;;  %v1009_v27 = vld [vmem:[#allocation5 + $0xd0] sm:$0xff]  ;;  %v984_v31 = vld [vmem:[#allocation5 + $0x8] sm:$0xff]  ;;  %v52_v33 = vmax.f32 %v48_v29, 0.0  ;;  %v983_v36 = vld [vmem:[#allocation5] sm:$0xff] }
  0x15   :  { %619 = vmatpush.bf16.msra.mxu1 %v996_v9  ;;  %v47_v28 = vld [vmem:[#allocation2 + $0x10] sm:$0xff]  ;;  %v992_v32 = vld [vmem:[#allocation5 + $0x48] sm:$0xff]  ;;  %v991_v37 = vld [vmem:[#allocation5 + $0x40] sm:$0xff] }
  0x16   :  { %632 = vmatpush.bf16.msra.mxu2 %v1004_v10  ;;  %57 = vst [vmem:[#allocation1] ss:$2 sm:$0xff] %v49_v23  ;;  %v51_v30 = vmax.f32 %v47_v28, 0.0  ;;  %v1000_v34 = vld [vmem:[#allocation5 + $0x88] sm:$0xff]  ;;  %v999_v38 = vld [vmem:[#allocation5 + $0x80] sm:$0xff]  ;;  %v1022_v40 = vld [vmem:[#allocation5 + $0x138] sm:$0xff] }
  0x17   :  { %645 = vmatpush.bf16.msra.mxu3 %v1012_v11  ;;  %v1008_v35 = vld [vmem:[#allocation5 + $0xc8] sm:$0xff]  ;;  %v1007_v39 = vld [vmem:[#allocation5 + $0xc0] sm:$0xff]  ;;  %v1030_v41 = vld [vmem:[#allocation5 + $0x178] sm:$0xff]  ;;  %63 = vst [vmem:[#allocation1 + $0x30] ss:$2 sm:$0xff] %v52_v33 }
  0x18   :  { %607 = vmatpush.bf16.msra.mxu0 %v987_v12  ;;  %61 = vst [vmem:[#allocation1 + $0x20] ss:$2 sm:$0xff] %v51_v30  ;;  %v1038_v46 = vld [vmem:[#allocation5 + $0x1b8] sm:$0xff]  ;;  %v1021_v52 = vld [vmem:[#allocation5 + $0x130] sm:$0xff]  ;;  %v1020_v56 = vld [vmem:[#allocation5 + $0x128] sm:$0xff] }
  0x19   :  { %620 = vmatpush.bf16.msra.mxu1 %v995_v13  ;;  %v1046_v47 = vld [vmem:[#allocation5 + $0x1f8] sm:$0xff]  ;;  %v1029_v53 = vld [vmem:[#allocation5 + $0x170] sm:$0xff]  ;;  %v1028_v57 = vld [vmem:[#allocation5 + $0x168] sm:$0xff] }
  0x1a   :  { %633 = vmatpush.bf16.msra.mxu2 %v1003_v14  ;;  %v66_v42 = vld.sshfl [vmem:[#allocation1 + $0x10] sm:$0xff pattern:$0x75316420]  ;;  %v67_v43 = vld.sshfl [vmem:[#allocation1 + $0x18] sm:$0xff pattern:$0x75316420] }
  0x1b   :  { %646 = vmatpush.bf16.msra.mxu3 %v1011_v15  ;;  %v82_v48 = vpack.c.bf16 %v66_v42, %v66_v42  ;;  %v83_v49 = vpack.c.bf16 %v67_v43, %v67_v43  ;;  %v1037_v54 = vld [vmem:[#allocation5 + $0x1b0] sm:$0xff]  ;;  %v1036_v58 = vld [vmem:[#allocation5 + $0x1a8] sm:$0xff]  ;;  %v1019_v60 = vld [vmem:[#allocation5 + $0x120] sm:$0xff] }
  0x1c   :  { %608 = vmatpush.bf16.msra.mxu0 %v986_v17  ;;  %v1045_v55 = vld [vmem:[#allocation5 + $0x1f0] sm:$0xff]  ;;  %v1044_v59 = vld [vmem:[#allocation5 + $0x1e8] sm:$0xff]  ;;  %v1027_v61 = vld [vmem:[#allocation5 + $0x160] sm:$0xff] }
  0x1d   :  { %621 = vmatpush.bf16.msra.mxu1 %v994_v18  ;;  %v64_v44 = vld.sshfl [vmem:[#allocation1] sm:$0xff pattern:$0x75316420]  ;;  %v65_v45 = vld.sshfl [vmem:[#allocation1 + $0x8] sm:$0xff pattern:$0x75316420] }
  0x1e   :  { %634 = vmatpush.bf16.msra.mxu2 %v1002_v20  ;;  %v80_v50 = vpack.c.bf16 %v64_v44, %v64_v44  ;;  %v81_v51 = vpack.c.bf16 %v65_v45, %v65_v45  ;;  %v1035_v62 = vld [vmem:[#allocation5 + $0x1a0] sm:$0xff]  ;;  %v1018_v0 = vld [vmem:[#allocation5 + $0x118] sm:$0xff]  ;;  %v1017_v4 = vld [vmem:[#allocation5 + $0x110] sm:$0xff] }
  0x1f   :  { %647 = vmatpush.bf16.msra.mxu3 %v1010_v21  ;;  %v1043_v63 = vld [vmem:[#allocation5 + $0x1e0] sm:$0xff]  ;;  %v1026_v1 = vld [vmem:[#allocation5 + $0x158] sm:$0xff]  ;;  %v1025_v5 = vld [vmem:[#allocation5 + $0x150] sm:$0xff] }
  0x20   :  { %609 = vmatpush.bf16.msra.mxu0 %v985_v24  ;;  %v1034_v2 = vld [vmem:[#allocation5 + $0x198] sm:$0xff]  ;;  %v1033_v6 = vld [vmem:[#allocation5 + $0x190] sm:$0xff]  ;;  %v1016_v8 = vld [vmem:[#allocation5 + $0x108] sm:$0xff] }
  0x21   :  { %622 = vmatpush.bf16.msra.mxu1 %v993_v25  ;;  %v1042_v3 = vld [vmem:[#allocation5 + $0x1d8] sm:$0xff]  ;;  %v1041_v7 = vld [vmem:[#allocation5 + $0x1d0] sm:$0xff]  ;;  %v1024_v9 = vld [vmem:[#allocation5 + $0x148] sm:$0xff] }
  0x22   :  { %635 = vmatpush.bf16.msra.mxu2 %v1001_v26  ;;  %v1032_v10 = vld [vmem:[#allocation5 + $0x188] sm:$0xff]  ;;  %v1015_v12 = vld [vmem:[#allocation5 + $0x100] sm:$0xff]  ;;  %v68_v16 = vld.sshfl [vmem:[#allocation1 + $0x20] sm:$0xff pattern:$0x75316420] }
  0x23   :  { %648 = vmatpush.bf16.msra.mxu3 %v1009_v27  ;;  %v1040_v11 = vld [vmem:[#allocation5 + $0x1c8] sm:$0xff]  ;;  %v1023_v13 = vld [vmem:[#allocation5 + $0x140] sm:$0xff]  ;;  %v71_v19 = vld.sshfl [vmem:[#allocation1 + $0x38] sm:$0xff pattern:$0x75316420]  ;;  %v84_v20 = vpack.c.bf16 %v68_v16, %v68_v16 }
  0x24   :  { %610 = vmatpush.bf16.msra.mxu0 %v984_v31  ;;  %v1031_v14 = vld [vmem:[#allocation5 + $0x180] sm:$0xff]  ;;  %v70_v18 = vld.sshfl [vmem:[#allocation1 + $0x30] sm:$0xff pattern:$0x75316420]  ;;  %v87_v23 = vpack.c.bf16 %v71_v19, %v71_v19  ;;  %v1052_v30 = vld [vmem:[%s1170_s2] ss:$0 sm:$0xff] }
  0x25   :  { %623 = vmatpush.bf16.msra.mxu1 %v992_v32  ;;  %v1039_v15 = vld [vmem:[#allocation5 + $0x1c0] sm:$0xff]  ;;  %v86_v22 = vpack.c.bf16 %v70_v18, %v70_v18 }
  0x26   :  { %636 = vmatpush.bf16.msra.mxu2 %v1000_v34  ;;  %v69_v17 = vld.sshfl [vmem:[#allocation1 + $0x28] sm:$0xff pattern:$0x75316420] }
  0x27   :  { %649 = vmatpush.bf16.msra.mxu3 %v1008_v35  ;;  %v85_v21 = vpack.c.bf16 %v69_v17, %v69_v17 }
  0x28   :  { %611 = vmatpush.bf16.msra.mxu0 %v983_v36 }
  0x29   :  { %624 = vmatpush.bf16.msra.mxu1 %v991_v37 }
  0x2a   :  { %637 = vmatpush.bf16.msra.mxu2 %v999_v38 }
  0x2b   :  { %650 = vmatpush.bf16.msra.mxu3 %v1007_v39  ;;  %612 = vmatmul.bf16.vlgmr.msra.gmra.mxu0 %v80_v50 }
  0x2c   :  { %656 = vmatpush.bf16.msrb.mxu0 %v1022_v40  ;;  %625 = vmatmul.bf16.vlgmr.msra.gmra.mxu1 %v81_v51 }
  0x2d   :  { %669 = vmatpush.bf16.msrb.mxu1 %v1030_v41  ;;  %638 = vmatmul.bf16.vlgmr.msra.gmra.mxu2 %v82_v48 }
  0x2e   :  { %682 = vmatpush.bf16.msrb.mxu2 %v1038_v46  ;;  %651 = vmatmul.bf16.vlgmr.msra.gmra.mxu3 %v83_v49 }
  0x2f   :  { %695 = vmatpush.bf16.msrb.mxu3 %v1046_v47 }
  0x30   :  { %657 = vmatpush.bf16.msrb.mxu0 %v1021_v52 }
  0x31   :  { %670 = vmatpush.bf16.msrb.mxu1 %v1029_v53 }
  0x32   :  { %683 = vmatpush.bf16.msrb.mxu2 %v1037_v54 }
  0x33   :  { %696 = vmatpush.bf16.msrb.mxu3 %v1045_v55 }
  0x34   :  { %658 = vmatpush.bf16.msrb.mxu0 %v1020_v56 }
  0x35   :  { %671 = vmatpush.bf16.msrb.mxu1 %v1028_v57 }
  0x36   :  { %684 = vmatpush.bf16.msrb.mxu2 %v1036_v58 }
  0x37   :  { %697 = vmatpush.bf16.msrb.mxu3 %v1044_v59 }
  0x38   :  { %659 = vmatpush.bf16.msrb.mxu0 %v1019_v60 }
  0x39   :  { %672 = vmatpush.bf16.msrb.mxu1 %v1027_v61 }
  0x3a   :  { %685 = vmatpush.bf16.msrb.mxu2 %v1035_v62 }
  0x3b   :  { %698 = vmatpush.bf16.msrb.mxu3 %v1043_v63 }
  0x3c   :  { %660 = vmatpush.bf16.msrb.mxu0 %v1018_v0 }
  0x3d   :  { %673 = vmatpush.bf16.msrb.mxu1 %v1026_v1 }
  0x3e   :  { %686 = vmatpush.bf16.msrb.mxu2 %v1034_v2 }
  0x3f   :  { %699 = vmatpush.bf16.msrb.mxu3 %v1042_v3 }
  0x40   :  { %661 = vmatpush.bf16.msrb.mxu0 %v1017_v4 }
  0x41   :  { %674 = vmatpush.bf16.msrb.mxu1 %v1025_v5 }
  0x42   :  { %687 = vmatpush.bf16.msrb.mxu2 %v1033_v6 }
  0x43   :  { %700 = vmatpush.bf16.msrb.mxu3 %v1041_v7 }
  0x44   :  { %662 = vmatpush.bf16.msrb.mxu0 %v1016_v8 }
  0x45   :  { %675 = vmatpush.bf16.msrb.mxu1 %v1024_v9 }
  0x46   :  { %688 = vmatpush.bf16.msrb.mxu2 %v1032_v10 }
  0x47   :  { %701 = vmatpush.bf16.msrb.mxu3 %v1040_v11 }
  0x48   :  { %663 = vmatpush.bf16.msrb.mxu0 %v1015_v12 }
  0x49   :  { %676 = vmatpush.bf16.msrb.mxu1 %v1023_v13 }
  0x4a   :  { %689 = vmatpush.bf16.msrb.mxu2 %v1031_v14 }
  0x4b   :  { %702 = vmatpush.bf16.msrb.mxu3 %v1039_v15  ;;  %664 = vmatmul.bf16.vlgmr.msrb.gmra.mxu0 %v84_v20 }
  0x4c   :  { %677 = vmatmul.bf16.vlgmr.msrb.gmra.mxu1 %v85_v21 }
  0x4d   :  { %690 = vmatmul.bf16.vlgmr.msrb.gmra.mxu2 %v86_v22 }
  0x4e   :  { %703 = vmatmul.bf16.vlgmr.msrb.gmra.mxu3 %v87_v23 }
  0xa8   :  { %v613_v24 = vpop.f32.mrf.mxu0 }
  0xa9   :  { %v626_v25 = vpop.f32.mrf.mxu1  ;;  %v614_v33 = vadd.f32 %v1052_v30, %v613_v24 }
  0xab   :  { %v627_v34 = vadd.f32 %v626_v25, %v614_v33 }
  0xb0   :  { %v639_v26 = vpop.f32.mrf.mxu2  ;;  %v615_v28 = vpop.f32.mrf.mxu0 }
  0xb1   :  { %v652_v27 = vpop.f32.mrf.mxu3  ;;  %v628_v29 = vpop.f32.mrf.mxu1  ;;  %v640_v35 = vadd.f32 %v639_v26, %v627_v34 }
  0xb3   :  { %v653_v36 = vadd.f32 %v652_v27, %v640_v35 }
  0xb8   :  { %v641_v31 = vpop.f32.mrf.mxu2 }
  0xb9   :  { %v654_v32 = vpop.f32.mrf.mxu3 }
  0xc8   :  { %v665_v37 = vpop.f32.mrf.mxu0 }
  0xc9   :  { %v678_v38 = vpop.f32.mrf.mxu1  ;;  %v666_v39 = vadd.f32 %v665_v37, %v653_v36 }
  0xcb   :  { %v679_v40 = vadd.f32 %v678_v38, %v666_v39 }
  0xd0   :  { %v691_v41 = vpop.f32.mrf.mxu2  ;;  %v667_v44 = vpop.f32.mrf.mxu0 }
  0xd1   :  { %v704_v42 = vpop.f32.mrf.mxu3  ;;  %v692_v43 = vadd.f32 %v691_v41, %v679_v40  ;;  %v680_v45 = vpop.f32.mrf.mxu1 }
  0xd3   :  { %v705_v46 = vadd.f32 %v704_v42, %v692_v43 }
  0xd5   :  { %708 = vst [vmem:[#allocation7] sm:$0xf] %v705_v46 }
  0xd6   :  { %719 = dma.vmem_to_hbm [thread:$0]  %s715_s25, 64, %s717_s28, [#allocation4]  }
  0xd8   :  { %v693_v47 = vpop.f32.mrf.mxu2 }
  0xd9   :  { %v706_v48 = vpop.f32.mrf.mxu3 }
  0xda   :  { %1129 = dma.done.wait [#allocation4], 64  }
  0xdb   :  { %1130 = vsyncadd [#allocation4], 4294967232 }
  0xdc   :  { %724 = vsyncpa [#allocation3], 1 }
  0xdd   :  { %725 = vsyncpa [#allocation6], 1 }
  0xde   :  { %726 = vsyncpa [#allocation4], 1 }

</bundles_post_ra>
